<compile_context>
chip_gen: v6e
topology: v6e:2x2x1
jax: 0.10.0
libtpu: 0.0.40
codegen_flags: <defaults>
</compile_context>

<pallas_src>
import jax
import jax.numpy as jnp
from jax.experimental import pallas as pl
from jax.experimental.pallas import tpu as pltpu

_EPS = 1e-5
_NEG_SLOPE = 0.01  # nn.LeakyReLU default


def _round_up(n, m):
    return (n + m - 1) // m * m


def _layout(num_feature, num_classes, hidden_dim):
    """Static packing layout shared by pack_params and the kernel builder."""
    F, C, H = num_feature, num_classes, hidden_dim
    H2 = 2 * H
    assert H2 >= C, "packing assumes 2*hidden_dim >= num_classes"
    K0 = _round_up(F + C + 1, 8)   # encoder contraction width ([x|y|1|0])
    K1 = _round_up(H2 + 1, 8)      # mid / de1 contraction width ([h|1|0])
    K3 = _round_up(C + 1, 8)       # de2 contraction width ([d|1|0])
    offs = (0, K0, K0 + K1, K0 + 2 * K1)          # row offsets (all 8-aligned)
    total = K0 + 2 * K1 + K3
    return dict(F=F, C=C, H=H, H2=H2, K0=K0, K1=K1, K3=K3, W=H2,
                offs=offs, total=total)


def _vmem_cap_bytes():
    try:
        info = pltpu.get_tpu_info()
        cap = getattr(info, "vmem_capacity_bytes", None)
        if cap:
            return int(cap)
    except Exception:
        pass
    return 64 * 1024 * 1024  # conservative: v7x per-TensorCore VMEM


# ----------------------------------------------------------------------------
# Kernel
# ----------------------------------------------------------------------------
def _build_kernel(num_feature, num_classes, hidden_dim):
    L = _layout(num_feature, num_classes, hidden_dim)
    C, H2 = L["C"], L["H2"]
    K0, K1, K3 = L["K0"], L["K1"], L["K3"]
    off_in, off_mid, off_de1, off_de2 = L["offs"]

    def kernel(x_ref, y_ref, w_ref, vec_ref, out_ref):
        B = x_ref.shape[0]
        mdt = w_ref.dtype

        def aug(parts, width):
            """[parts... | 1 | 0-pad] lane-packed to `width` (bias fold column)."""
            parts = list(parts)
            cur = sum(a.shape[1] for a in parts)
            tail_w = width - cur                       # >= 1 by construction
            lane = jax.lax.broadcasted_iota(jnp.int32, (B, tail_w), 1)
            parts.append(jnp.where(lane == 0, 1.0, 0.0).astype(jnp.float32))
            return jnp.concatenate(parts, axis=-1)

        def leaky(v):
            return jnp.where(v >= 0, v, _NEG_SLOPE * v)

        def bn(h, gamma, beta):
            """Training-mode BatchNorm1d folded into one scale/shift.

            sum(h) and sum(h*h) are done as a single lane-packed reduction;
            biased variance E[h^2]-E[h]^2 clamped at 0 against f32 rounding.
            """
            inv_n = 1.0 / h.shape[0]
            n_lanes = h.shape[1]
            red = jnp.sum(jnp.concatenate([h, h * h], axis=-1),
                          axis=0, keepdims=True)
            mean = red[:, :n_lanes] * inv_n
            var = jnp.maximum(red[:, n_lanes:] * inv_n - mean * mean, 0.0)
            scale = gamma * jax.lax.rsqrt(var + _EPS)
            shift = beta - mean * scale
            return h * scale + shift

        g_in = vec_ref[0:1, 0:H2]
        be_in = vec_ref[1:2, 0:H2]
        g_de1 = vec_ref[0:1, H2:H2 + C]
        be_de1 = vec_ref[1:2, H2:H2 + C]

        # --- packed encoder: [hx|hy] = BN(LeakyReLU([x|y|1] @ blockdiag+bias)) ---
        a0 = aug([x_ref[...], y_ref[...]], K0)
        h = jnp.dot(a0.astype(mdt), w_ref[off_in:off_in + K0, 0:H2],
                    preferred_element_type=jnp.float32)
        h = bn(leaky(h), g_in, be_in)

        # --- packed residual: [xo|yo] = h + [h|1] @ blockdiag(fe2,le2)+bias ---
        xo_yo = h + jnp.dot(aug([h], K1).astype(mdt),
                            w_ref[off_mid:off_mid + K1, 0:H2],
                            preferred_element_type=jnp.float32)

        # --- decoder stage 1: d = BN(LeakyReLU([xo|yo|1] @ w_de1+bias)) ---
        d = jnp.dot(aug([xo_yo], K1).astype(mdt),
                    w_ref[off_de1:off_de1 + K1, 0:C],
                    preferred_element_type=jnp.float32)
        d = bn(leaky(d), g_de1, be_de1)

        # --- decoder stage 2 + residual: out = d + [d|1] @ w_de2+bias ---
        out = d + jnp.dot(aug([d], K3).astype(mdt),
                          w_ref[off_de2:off_de2 + K3, 0:C],
                          preferred_element_type=jnp.float32)

        out_ref[...] = out.astype(out_ref.dtype)

    return kernel


def le_forward(x, y, packed):
    """x: (B, num_feature) f32, y: (B, num_classes) f32 -> (B, num_classes) f32."""
    B, F = x.shape
    C = y.shape[1]
    H2 = packed["vec_blob"].shape[1] - C
    H = H2 // 2
    L = _layout(F, C, H)

    inputs = (x, y, packed["w_blob"], packed["vec_blob"])

    in_bytes = sum(int(a.size) * a.dtype.itemsize for a in inputs)
    out_bytes = B * C * 4
    # FLOPs the MXU actually executes (includes block-diag / alignment padding).
    flops = 2 * B * (L["K0"] * H2 + L["K1"] * H2 + L["K1"] * C + L["K3"] * C)
    cost = pl.CostEstimate(flops=flops, transcendentals=H2 + C,
                           bytes_accessed=in_bytes + out_bytes)

    # Generation-aware VMEM budget: footprint * headroom, capped at half of
    # physical VMEM (safe on v7x's 64 MiB/TC as well as v5e/v6e's 128 MiB).
    vmem_limit = int(min(_vmem_cap_bytes() // 2,
                         max(4 * 1024 * 1024, 16 * (in_bytes + out_bytes))))

    vmem = pl.BlockSpec(memory_space=pltpu.MemorySpace.VMEM)
    return pl.pallas_call(
        _build_kernel(F, C, H),
        out_shape=jax.ShapeDtypeStruct((B, C), jnp.float32),
        in_specs=[vmem] * len(inputs),
        out_specs=vmem,
        cost_estimate=cost,
        compiler_params=pltpu.CompilerParams(vmem_limit_bytes=vmem_limit),
    )(*inputs)


# ----------------------------------------------------------------------------
# Parameter construction (mimics PyTorch defaults) and packing.
# ----------------------------------------------------------------------------
def _linear_params(key, fan_in, fan_out):
    """nn.Linear default init U(-1/sqrt(in), 1/sqrt(in)); weight pre-transposed
    to (in, out), bias as (1, out)."""
    kw, kb = jax.random.split(key)
    bound = 1.0 / jnp.sqrt(fan_in)
    w = jax.random.uniform(kw, (fan_in, fan_out), jnp.float32, -bound, bound)
    b = jax.random.uniform(kb, (1, fan_out), jnp.float32, -bound, bound)
    return w, b


def make_params(key, num_feature, num_classes, hidden_dim):
    keys = jax.random.split(key, 6)
    p = {}
    p["w_fe1"], p["b_fe1"] = _linear_params(keys[0], num_feature, hidden_dim)
    p["w_fe2"], p["b_fe2"] = _linear_params(keys[1], hidden_dim, hidden_dim)
    p["w_le1"], p["b_le1"] = _linear_params(keys[2], num_classes, hidden_dim)
    p["w_le2"], p["b_le2"] = _linear_params(keys[3], hidden_dim, hidden_dim)
    p["w_de1"], p["b_de1"] = _linear_params(keys[4], 2 * hidden_dim, num_classes)
    p["w_de2"], p["b_de2"] = _linear_params(keys[5], num_classes, num_classes)
    # BatchNorm1d affine params at PyTorch init: gamma=1, beta=0.
    p["g_fe1"] = jnp.ones((1, hidden_dim), jnp.float32)
    p["be_fe1"] = jnp.zeros((1, hidden_dim), jnp.float32)
    p["g_le1"] = jnp.ones((1, hidden_dim), jnp.float32)
    p["be_le1"] = jnp.zeros((1, hidden_dim), jnp.float32)
    p["g_de1"] = jnp.ones((1, num_classes), jnp.float32)
    p["be_de1"] = jnp.zeros((1, num_classes), jnp.float32)
    return p


def pack_params(p, num_feature, num_classes, hidden_dim,
                matmul_dtype=jnp.float32):
    """Pack all weights (+ folded biases) into one blob and all gamma/beta
    vectors into another.

    Encoder / mid weights are block-diagonal so the lane-packed [x|y] branch
    trick works; biases become an extra weight row multiplied by the ones
    column the kernel appends to each activation.  For non-toy hidden sizes
    pass matmul_dtype=jnp.bfloat16 (f32 accumulation kept in the kernel).
    """
    F, C, H = num_feature, num_classes, hidden_dim
    L = _layout(F, C, H)
    H2, W = L["H2"], L["W"]

    def block(w, b, rows):
        blk = jnp.zeros((rows, W), jnp.float32)
        blk = blk.at[: w.shape[0], : w.shape[1]].set(w)
        blk = blk.at[w.shape[0], : w.shape[1]].set(b[0])   # folded bias row
        return blk

    w_in = jnp.zeros((F + C, H2), jnp.float32)
    w_in = w_in.at[:F, :H].set(p["w_fe1"]).at[F:, H:].set(p["w_le1"])
    b_in = jnp.concatenate([p["b_fe1"], p["b_le1"]], axis=-1)

    w_mid = jnp.zeros((H2, H2), jnp.float32)
    w_mid = w_mid.at[:H, :H].set(p["w_fe2"]).at[H:, H:].set(p["w_le2"])
    b_mid = jnp.concatenate([p["b_fe2"], p["b_le2"]], axis=-1)

    w_blob = jnp.concatenate([
        block(w_in, b_in, L["K0"]),
        block(w_mid, b_mid, L["K1"]),
        block(p["w_de1"], p["b_de1"], L["K1"]),
        block(p["w_de2"], p["b_de2"], L["K3"]),
    ], axis=0).astype(matmul_dtype)

    vec_blob = jnp.stack([
        jnp.concatenate([p["g_fe1"][0], p["g_le1"][0], p["g_de1"][0]]),
        jnp.concatenate([p["be_fe1"][0], p["be_le1"][0], p["be_de1"][0]]),
    ], axis=0)                                              # (2, 2H + C) f32

    return dict(w_blob=w_blob, vec_blob=vec_blob)


# ----------------------------------------------------------------------------
# Pure-JAX reference (unpacked, non-folded BN) for a correctness check.
# ----------------------------------------------------------------------------
def _leaky_relu(v):
    return jnp.where(v >= 0, v, _NEG_SLOPE * v)


def _bn_ref(h, gamma, beta):
    mean = jnp.mean(h, axis=0, keepdims=True)
    var = jnp.mean((h - mean) ** 2, axis=0, keepdims=True)
    return (h - mean) * jax.lax.rsqrt(var + _EPS) * gamma + beta


def _reference(x, y, p):
    def blockf(v, w, b, g, be):
        return _bn_ref(_leaky_relu(v @ w + b), g, be)

    xh = blockf(x, p["w_fe1"], p["b_fe1"], p["g_fe1"], p["be_fe1"])
    xo = xh + (xh @ p["w_fe2"] + p["b_fe2"])
    yh = blockf(y, p["w_le1"], p["b_le1"], p["g_le1"], p["be_le1"])
    yo = yh + (yh @ p["w_le2"] + p["b_le2"])
    d = jnp.concatenate([xo, yo], axis=-1)
    dh = blockf(d, p["w_de1"], p["b_de1"], p["g_de1"], p["be_de1"])
    return dh + (dh @ p["w_de2"] + p["b_de2"])


if __name__ == "__main__":
    B, num_feature, num_classes, hidden_dim = 8, 16, 8, 32

    key = jax.random.PRNGKey(0)
    kx, ky, kp = jax.random.split(key, 3)
    x = jax.random.normal(kx, (B, num_feature), jnp.float32)
    y = jax.random.normal(ky, (B, num_classes), jnp.float32)

    raw_params = make_params(kp, num_feature, num_classes, hidden_dim)
    packed = pack_params(raw_params, num_feature, num_classes, hidden_dim)

    out = jax.block_until_ready(le_forward(x, y, packed))

    ref = _reference(x, y, raw_params)
    assert out.shape == (B, num_classes)
    assert jnp.allclose(out, ref, atol=1e-4, rtol=1e-4), "mismatch vs reference"

    print("KERNEL_OK")
</pallas_src>

<mosaic_0001>
module attributes {stable_mosaic.version = 11 : i64} {
  func.func @kernel(%arg0: memref<8x16xf32, #tpu.memory_space<vmem>>, %arg1: memref<8x8xf32, #tpu.memory_space<vmem>>, %arg2: memref<192x64xf32, #tpu.memory_space<vmem>>, %arg3: memref<2x72xf32, #tpu.memory_space<vmem>>, %arg4: memref<8x8xf32, #tpu.memory_space<vmem>>) attributes {dimension_semantics = [], scalar_prefetch = 0 : i64, scratch_operands = 0 : i64, tpu.core_type = #tpu.core_type<tc>} {
    %c0 = arith.constant 0 : index
    %c0_0 = arith.constant 0 : index
    %0 = vector.load %arg3[%c0, %c0_0] : memref<2x72xf32, #tpu.memory_space<vmem>>, vector<1x64xf32>
    %c1 = arith.constant 1 : index
    %c0_1 = arith.constant 0 : index
    %1 = vector.load %arg3[%c1, %c0_1] : memref<2x72xf32, #tpu.memory_space<vmem>>, vector<1x64xf32>
    %c0_2 = arith.constant 0 : index
    %c64 = arith.constant 64 : index
    %2 = vector.load %arg3[%c0_2, %c64] : memref<2x72xf32, #tpu.memory_space<vmem>>, vector<1x8xf32>
    %c1_3 = arith.constant 1 : index
    %c64_4 = arith.constant 64 : index
    %3 = vector.load %arg3[%c1_3, %c64_4] : memref<2x72xf32, #tpu.memory_space<vmem>>, vector<1x8xf32>
    %c0_5 = arith.constant 0 : index
    %c0_6 = arith.constant 0 : index
    %4 = vector.load %arg0[%c0_5, %c0_6] : memref<8x16xf32, #tpu.memory_space<vmem>>, vector<8x16xf32>
    %c0_7 = arith.constant 0 : index
    %c0_8 = arith.constant 0 : index
    %5 = vector.load %arg1[%c0_7, %c0_8] : memref<8x8xf32, #tpu.memory_space<vmem>>, vector<8x8xf32>
    %6 = tpu.iota {dimensions = array<i32: 1>} : vector<8x8xi32>
    %c0_i32 = arith.constant 0 : i32
    %7 = vector.broadcast %c0_i32 : i32 to vector<8x8xi32>
    %8 = arith.cmpi eq, %6, %7 : vector<8x8xi32>
    %cst = arith.constant 1.000000e+00 : f32
    %cst_9 = arith.constant 0.000000e+00 : f32
    %9 = vector.broadcast %cst : f32 to vector<8x8xf32>
    %10 = vector.broadcast %cst_9 : f32 to vector<8x8xf32>
    %11 = arith.select %8, %9, %10 : vector<8x8xi1>, vector<8x8xf32>
    %12 = tpu.concatenate %4, %5, %11 in 1 : vector<8x16xf32>, vector<8x8xf32>, vector<8x8xf32> -> vector<8x32xf32>
    %c0_10 = arith.constant 0 : index
    %c0_11 = arith.constant 0 : index
    %13 = vector.load %arg2[%c0_10, %c0_11] : memref<192x64xf32, #tpu.memory_space<vmem>>, vector<32x64xf32>
    %cst_12 = arith.constant dense<0.000000e+00> : vector<8x64xf32>
    %14 = tpu.matmul %12, %13, %cst_12 {dimension_numbers = #tpu.dot_dimension_numbers<[1], [0], [0], [1], [0, 0, 1, 1], [], []>} : vector<8x32xf32>, vector<32x64xf32>, vector<8x64xf32> -> vector<8x64xf32>
    %cst_13 = arith.constant 0.000000e+00 : f32
    %15 = vector.broadcast %cst_13 : f32 to vector<8x64xf32>
    %16 = arith.cmpf oge, %14, %15 : vector<8x64xf32>
    %cst_14 = arith.constant 0.00999999977 : f32
    %17 = vector.broadcast %cst_14 : f32 to vector<8x64xf32>
    %18 = arith.mulf %17, %14 : vector<8x64xf32>
    %19 = arith.select %16, %14, %18 : vector<8x64xi1>, vector<8x64xf32>
    %20 = arith.mulf %19, %19 : vector<8x64xf32>
    %21 = tpu.concatenate %19, %20 in 1 : vector<8x64xf32>, vector<8x64xf32> -> vector<8x128xf32>
    %cst_15 = arith.constant dense<0.000000e+00> : vector<128xf32>
    %22 = vector.multi_reduction <add>, %21, %cst_15 [0] : vector<8x128xf32> to vector<128xf32>
    %23 = vector.shape_cast %22 : vector<128xf32> to vector<1x128xf32>
    %24 = vector.extract_strided_slice %23 {offsets = [0, 0], sizes = [1, 64], strides = [1, 1]} : vector<1x128xf32> to vector<1x64xf32>
    %cst_16 = arith.constant 1.250000e-01 : f32
    %25 = vector.broadcast %cst_16 : f32 to vector<1x64xf32>
    %26 = arith.mulf %24, %25 : vector<1x64xf32>
    %27 = vector.extract_strided_slice %23 {offsets = [0, 64], sizes = [1, 64], strides = [1, 1]} : vector<1x128xf32> to vector<1x64xf32>
    %cst_17 = arith.constant 1.250000e-01 : f32
    %28 = vector.broadcast %cst_17 : f32 to vector<1x64xf32>
    %29 = arith.mulf %27, %28 : vector<1x64xf32>
    %30 = arith.mulf %26, %26 : vector<1x64xf32>
    %31 = arith.subf %29, %30 : vector<1x64xf32>
    %cst_18 = arith.constant 0.000000e+00 : f32
    %32 = vector.broadcast %cst_18 : f32 to vector<1x64xf32>
    %33 = arith.maximumf %31, %32 : vector<1x64xf32>
    %cst_19 = arith.constant 9.99999974E-6 : f32
    %34 = vector.broadcast %cst_19 : f32 to vector<1x64xf32>
    %35 = arith.addf %33, %34 : vector<1x64xf32>
    %36 = math.rsqrt %35 : vector<1x64xf32>
    %37 = arith.mulf %0, %36 : vector<1x64xf32>
    %38 = arith.mulf %26, %37 : vector<1x64xf32>
    %39 = arith.subf %1, %38 : vector<1x64xf32>
    %40 = vector.broadcast %37 : vector<1x64xf32> to vector<8x64xf32>
    %41 = arith.mulf %19, %40 : vector<8x64xf32>
    %42 = vector.broadcast %39 : vector<1x64xf32> to vector<8x64xf32>
    %43 = arith.addf %41, %42 : vector<8x64xf32>
    %44 = tpu.iota {dimensions = array<i32: 1>} : vector<8x8xi32>
    %c0_i32_20 = arith.constant 0 : i32
    %45 = vector.broadcast %c0_i32_20 : i32 to vector<8x8xi32>
    %46 = arith.cmpi eq, %44, %45 : vector<8x8xi32>
    %cst_21 = arith.constant 1.000000e+00 : f32
    %cst_22 = arith.constant 0.000000e+00 : f32
    %47 = vector.broadcast %cst_21 : f32 to vector<8x8xf32>
    %48 = vector.broadcast %cst_22 : f32 to vector<8x8xf32>
    %49 = arith.select %46, %47, %48 : vector<8x8xi1>, vector<8x8xf32>
    %50 = tpu.concatenate %43, %49 in 1 : vector<8x64xf32>, vector<8x8xf32> -> vector<8x72xf32>
    %c32 = arith.constant 32 : index
    %c0_23 = arith.constant 0 : index
    %51 = vector.load %arg2[%c32, %c0_23] : memref<192x64xf32, #tpu.memory_space<vmem>>, vector<72x64xf32>
    %cst_24 = arith.constant dense<0.000000e+00> : vector<8x64xf32>
    %52 = tpu.matmul %50, %51, %cst_24 {dimension_numbers = #tpu.dot_dimension_numbers<[1], [0], [0], [1], [0, 0, 1, 1], [], []>} : vector<8x72xf32>, vector<72x64xf32>, vector<8x64xf32> -> vector<8x64xf32>
    %53 = arith.addf %43, %52 : vector<8x64xf32>
    %54 = tpu.iota {dimensions = array<i32: 1>} : vector<8x8xi32>
    %c0_i32_25 = arith.constant 0 : i32
    %55 = vector.broadcast %c0_i32_25 : i32 to vector<8x8xi32>
    %56 = arith.cmpi eq, %54, %55 : vector<8x8xi32>
    %cst_26 = arith.constant 1.000000e+00 : f32
    %cst_27 = arith.constant 0.000000e+00 : f32
    %57 = vector.broadcast %cst_26 : f32 to vector<8x8xf32>
    %58 = vector.broadcast %cst_27 : f32 to vector<8x8xf32>
    %59 = arith.select %56, %57, %58 : vector<8x8xi1>, vector<8x8xf32>
    %60 = tpu.concatenate %53, %59 in 1 : vector<8x64xf32>, vector<8x8xf32> -> vector<8x72xf32>
    %c104 = arith.constant 104 : index
    %c0_28 = arith.constant 0 : index
    %61 = vector.load %arg2[%c104, %c0_28] : memref<192x64xf32, #tpu.memory_space<vmem>>, vector<72x8xf32>
    %cst_29 = arith.constant dense<0.000000e+00> : vector<8x8xf32>
    %62 = tpu.matmul %60, %61, %cst_29 {dimension_numbers = #tpu.dot_dimension_numbers<[1], [0], [0], [1], [0, 0, 1, 1], [], []>} : vector<8x72xf32>, vector<72x8xf32>, vector<8x8xf32> -> vector<8x8xf32>
    %cst_30 = arith.constant 0.000000e+00 : f32
    %63 = vector.broadcast %cst_30 : f32 to vector<8x8xf32>
    %64 = arith.cmpf oge, %62, %63 : vector<8x8xf32>
    %cst_31 = arith.constant 0.00999999977 : f32
    %65 = vector.broadcast %cst_31 : f32 to vector<8x8xf32>
    %66 = arith.mulf %65, %62 : vector<8x8xf32>
    %67 = arith.select %64, %62, %66 : vector<8x8xi1>, vector<8x8xf32>
    %68 = arith.mulf %67, %67 : vector<8x8xf32>
    %69 = tpu.concatenate %67, %68 in 1 : vector<8x8xf32>, vector<8x8xf32> -> vector<8x16xf32>
    %cst_32 = arith.constant dense<0.000000e+00> : vector<16xf32>
    %70 = vector.multi_reduction <add>, %69, %cst_32 [0] : vector<8x16xf32> to vector<16xf32>
    %71 = vector.shape_cast %70 : vector<16xf32> to vector<1x16xf32>
    %72 = vector.extract_strided_slice %71 {offsets = [0, 0], sizes = [1, 8], strides = [1, 1]} : vector<1x16xf32> to vector<1x8xf32>
    %cst_33 = arith.constant 1.250000e-01 : f32
    %73 = vector.broadcast %cst_33 : f32 to vector<1x8xf32>
    %74 = arith.mulf %72, %73 : vector<1x8xf32>
    %75 = vector.extract_strided_slice %71 {offsets = [0, 8], sizes = [1, 8], strides = [1, 1]} : vector<1x16xf32> to vector<1x8xf32>
    %cst_34 = arith.constant 1.250000e-01 : f32
    %76 = vector.broadcast %cst_34 : f32 to vector<1x8xf32>
    %77 = arith.mulf %75, %76 : vector<1x8xf32>
    %78 = arith.mulf %74, %74 : vector<1x8xf32>
    %79 = arith.subf %77, %78 : vector<1x8xf32>
    %cst_35 = arith.constant 0.000000e+00 : f32
    %80 = vector.broadcast %cst_35 : f32 to vector<1x8xf32>
    %81 = arith.maximumf %79, %80 : vector<1x8xf32>
    %cst_36 = arith.constant 9.99999974E-6 : f32
    %82 = vector.broadcast %cst_36 : f32 to vector<1x8xf32>
    %83 = arith.addf %81, %82 : vector<1x8xf32>
    %84 = math.rsqrt %83 : vector<1x8xf32>
    %85 = arith.mulf %2, %84 : vector<1x8xf32>
    %86 = arith.mulf %74, %85 : vector<1x8xf32>
    %87 = arith.subf %3, %86 : vector<1x8xf32>
    %88 = vector.broadcast %85 : vector<1x8xf32> to vector<8x8xf32>
    %89 = arith.mulf %67, %88 : vector<8x8xf32>
    %90 = vector.broadcast %87 : vector<1x8xf32> to vector<8x8xf32>
    %91 = arith.addf %89, %90 : vector<8x8xf32>
    %92 = tpu.iota {dimensions = array<i32: 1>} : vector<8x8xi32>
    %c0_i32_37 = arith.constant 0 : i32
    %93 = vector.broadcast %c0_i32_37 : i32 to vector<8x8xi32>
    %94 = arith.cmpi eq, %92, %93 : vector<8x8xi32>
    %cst_38 = arith.constant 1.000000e+00 : f32
    %cst_39 = arith.constant 0.000000e+00 : f32
    %95 = vector.broadcast %cst_38 : f32 to vector<8x8xf32>
    %96 = vector.broadcast %cst_39 : f32 to vector<8x8xf32>
    %97 = arith.select %94, %95, %96 : vector<8x8xi1>, vector<8x8xf32>
    %98 = tpu.concatenate %91, %97 in 1 : vector<8x8xf32>, vector<8x8xf32> -> vector<8x16xf32>
    %c176 = arith.constant 176 : index
    %c0_40 = arith.constant 0 : index
    %99 = vector.load %arg2[%c176, %c0_40] : memref<192x64xf32, #tpu.memory_space<vmem>>, vector<16x8xf32>
    %cst_41 = arith.constant dense<0.000000e+00> : vector<8x8xf32>
    %100 = tpu.matmul %98, %99, %cst_41 {dimension_numbers = #tpu.dot_dimension_numbers<[1], [0], [0], [1], [0, 0, 1, 1], [], []>} : vector<8x16xf32>, vector<16x8xf32>, vector<8x8xf32> -> vector<8x8xf32>
    %101 = arith.addf %91, %100 : vector<8x8xf32>
    %c0_42 = arith.constant 0 : index
    %c0_43 = arith.constant 0 : index
    %102 = vector.load %arg4[%c0_42, %c0_43] : memref<8x8xf32, #tpu.memory_space<vmem>>, vector<8x8xf32>
    tpu.vector_store %arg4[%c0_42, %c0_43], %101 {strides = array<i32>} : memref<8x8xf32, #tpu.memory_space<vmem>>, vector<8x8xf32>,
    return
  }
}

</mosaic_0001>

<bundles_post_ra>
// kernel: tpu_custom_call.1
= control target key start
LH: loop header
LB: loop body
LE: loop exit
PB: predicated region body
PF: predicated region fallthrough
CT: control target
= control target key end

     0   :  { %v22_v1 = vlaneseq  ;;  %s611_s19 = smov 16   ;;  %v612_v3 = vmov 0.0   ;;  %vm613_vm0 = vmmov 0   ;;  %s810_s0 = inlined_call_operand.vmem [shape: f32[8,16], index: 0, kind: input, shape index: {}]   ;;  %s811_s1 = inlined_call_operand.vmem [shape: f32[8,8], index: 1, kind: input, shape index: {}]   ;;  %s812_s2 = inlined_call_operand.vmem [shape: f32[192,64], index: 2, kind: input, shape index: {}]   ;;  %s813_s3 = inlined_call_operand.vmem [shape: f32[2,72], index: 3, kind: input, shape index: {}]   ;;  %s814_s4 = inlined_call_operand.hbm [shape: f32[8,8], index: 4, kind: output, shape index: {}]  }
   0x1   :  { %v21_v0 = vld [vmem:[%s811_s1] sm:$0xff]  ;;  %v41_v2 = vld [vmem:[%s812_s2 + $0x18] sm:$0xff]  ;;  %517 = vmatprep.subr.mxu0 %v612_v3  ;;  %v40_v4 = vld [vmem:[%s812_s2 + $0x10] sm:$0xff]  ;;  %525 = vmatprep.mubr.msk.f32.mxu0 %vm613_vm0, %v612_v3 }
   0x2   :  { %27 = vrot.lane.b32.xlu0 %v21_v0, %s611_s19  ;;  %v23_v5 = vand.u32 127, %v22_v1  ;;  %518 = vmatpush3.msra.mxu0 %v41_v2 }
   0x3   :  { %9 = vsyncpa [#allocation3], 0  ;;  %519 = vmatprep.subr.mxu0 %v612_v3  ;;  %v39_v6 = vld [vmem:[%s812_s2 + $0x8] sm:$0xff]  ;;  %528 = vmatprep.subr.mxu1 %v612_v3  ;;  %v38_v8 = vld [vmem:[%s812_s2] sm:$0xff]  ;;  %s614_s25 = smov 24   ;;  %vm34_vm2 = vcmask 130048  }
   0x4   :  { %vm24_vm1 = vcmp.eq.s32.totalorder %v23_v5, 0  ;;  %520 = vmatpush3.msra.mxu0 %v40_v4  ;;  %546 = vmatprep.mubr.msk.f32.mxu1 %vm613_vm0, %v612_v3  ;;  %v20_v10 = vld [vmem:[%s810_s0] sm:$0xff]  ;;  %vm36_vm3 = vcmask 195584   ;;  %vm42_vm4 = vcmask 261120   ;;  %s615_s0 = smov 64   ;;  %vm124_vm6 = vcmask 523264  }
   0x5   :  { %v665_v7 = vsel %vm24_vm1, 1.0, %v612_v3  ;;  %521 = vmatprep.subr.mxu0 %v612_v3  ;;  %v171_v29 = vld [vmem:[%s812_s2 + $0x60] sm:$0xff]  ;;  %v170_v30 = vld [vmem:[%s812_s2 + $0x58] sm:$0xff]  ;;  %v169_v31 = vld [vmem:[%s812_s2 + $0x50] sm:$0xff]  ;;  %v150_v50 = vshrl.u32 %v22_v1, 7  ;;  %vm172_vm7 = vcmask 588800  }
   0x6   :  { %31 = vrot.lane.b32.xlu0 %v665_v7, %s614_s25  ;;  %522 = vmatpush3.msra.mxu0 %v39_v6  ;;  %v168_v36 = vld [vmem:[%s812_s2 + $0x48] sm:$0xff]  ;;  %v167_v37 = vld [vmem:[%s812_s2 + $0x40] sm:$0xff]  ;;  %v166_v38 = vld [vmem:[%s812_s2 + $0x38] sm:$0xff]  ;;  %s616_s14 = smov 8   ;;  %vm338_vm9 = vcmask 64512   ;;  %s617_s15 = smov 56  }
   0x7   :  { %523 = vmatprep.subr.mxu0 %v612_v3  ;;  %529 = vmatpush3.msra.mxu1 %v171_v29  ;;  %v165_v39 = vld [vmem:[%s812_s2 + $0x30] sm:$0xff]  ;;  %v164_v40 = vld [vmem:[%s812_s2 + $0x28] sm:$0xff]  ;;  %v163_v41 = vld [vmem:[%s812_s2 + $0x20] sm:$0xff]  ;;  %v764_v52 = vsub.s32 0, %v150_v50  ;;  %s618_s20 = smov [#allocation2]  }
   0x8   :  { %524 = vmatpush3.msra.mxu0 %v38_v8  ;;  %530 = vmatprep.subr.mxu1 %v612_v3  ;;  %v256_v42 = vld [vmem:[%s812_s2 + $0xa8] sm:$0xff]  ;;  %v255_v43 = vld [vmem:[%s812_s2 + $0xa0] sm:$0xff]  ;;  %v254_v45 = vld [vmem:[%s812_s2 + $0x98] sm:$0xff]  ;;  %s477_s21 = sshll.u32 %s618_s20, 4  ;;  %s478_s21 = int_to_ptr.vmem [resolvable:$true] %s477_s21 }
   0x9   :  { %549 = vmatprep.subr.mxu0 %v612_v3  ;;  %531 = vmatpush3.msra.mxu1 %v170_v30  ;;  %v253_v46 = vld [vmem:[%s812_s2 + $0x90] sm:$0xff]  ;;  %v252_v47 = vld [vmem:[%s812_s2 + $0x88] sm:$0xff]  ;;  %v251_v48 = vld [vmem:[%s812_s2 + $0x80] sm:$0xff]  ;;  %p594_p1 = scmp.lt.s32.totalorder %s478_s21, %s478_s21 }
   0xa   :  { %532 = vmatprep.subr.mxu1 %v612_v3  ;;  %v250_v49 = vld [vmem:[%s812_s2 + $0x78] sm:$0xff]  ;;  %v18_v51 = vld [vmem:[%s813_s3] sm:$0x1]  ;;  %v769_v55 = vld [vmem:[%s813_s3 + $0x1] sm:$0x1] }
   0xb   :  { %533 = vmatpush3.msra.mxu1 %v169_v31  ;;  %v249_v0 = vld [vmem:[%s812_s2 + $0x70] sm:$0xff]  ;;  %v248_v1 = vld [vmem:[%s812_s2 + $0x68] sm:$0xff] }
   0xc   :  { %534 = vmatprep.subr.mxu1 %v612_v3 }
   0xd   :  { %535 = vmatpush3.msra.mxu1 %v168_v36 }
   0xe   :  { %536 = vmatprep.subr.mxu1 %v612_v3 }
   0xf   :  { %537 = vmatpush3.msra.mxu1 %v167_v37 }
  0x10   :  { %538 = vmatprep.subr.mxu1 %v612_v3 }
  0x11   :  { %539 = vmatpush3.msra.mxu1 %v166_v38 }
  0x12   :  { %540 = vmatprep.subr.mxu1 %v612_v3 }
  0x13   :  { %541 = vmatpush3.msra.mxu1 %v165_v39 }
  0x14   :  { %542 = vmatprep.subr.mxu1 %v612_v3 }
  0x15   :  { %543 = vmatpush3.msra.mxu1 %v164_v40 }
  0x16   :  { %544 = vmatprep.subr.mxu1 %v612_v3 }
  0x17   :  { %545 = vmatpush3.msra.mxu1 %v163_v41 }
  0x18   :  { %570 = vmatprep.subr.mxu1 %v612_v3 }
  0x74   :  { %v28_v9 = vpop.permute.xlu0 %27 }
  0x75   :  { %v35_v11 = vsel %vm34_vm2, %v20_v10, %v28_v9 }
  0x78   :  { %v32_v12 = vpop.permute.xlu0 %31 }
  0x79   :  { %v37_v13 = vsel %vm36_vm3, %v35_v11, %v32_v12 }
  0x7a   :  { %526 = vmatmul.mubr.msk.f32.vlgmr.msra.gmra.mxu0 %vm42_vm4, %v37_v13 }
  0x7b   :  { %567 = vmatprep.mubr.msk.f32.mxu0 %vm613_vm0, %v612_v3  ;;  %550 = vmatpush3.msra.mxu0 %v256_v42 }
  0x7c   :  { %551 = vmatprep.subr.mxu0 %v612_v3 }
  0x7d   :  { %552 = vmatpush3.msra.mxu0 %v255_v43 }
  0x7e   :  { %553 = vmatprep.subr.mxu0 %v612_v3 }
  0x7f   :  { %554 = vmatpush3.msra.mxu0 %v254_v45 }
  0x80   :  { %555 = vmatprep.subr.mxu0 %v612_v3 }
  0x81   :  { %556 = vmatpush3.msra.mxu0 %v253_v46 }
  0x82   :  { %557 = vmatprep.subr.mxu0 %v612_v3 }
  0x83   :  { %558 = vmatpush3.msra.mxu0 %v252_v47 }
  0x84   :  { %559 = vmatprep.subr.mxu0 %v612_v3 }
  0x85   :  { %560 = vmatpush3.msra.mxu0 %v251_v48 }
  0x86   :  { %561 = vmatprep.subr.mxu0 %v612_v3 }
  0x87   :  { %562 = vmatpush3.msra.mxu0 %v250_v49 }
  0x88   :  { %563 = vmatprep.subr.mxu0 %v612_v3 }
  0x89   :  { %564 = vmatpush3.msra.mxu0 %v249_v0 }
  0x8a   :  { %565 = vmatprep.subr.mxu0 %v612_v3 }
  0x8b   :  { %566 = vmatpush3.msra.mxu0 %v248_v1 }
 0x13a   :  { %v112_v14 = vpop.f32.mrf.mxu0 }
 0x13b   :  { %vm116_vm5 = vcmp.ge.f32.partialorder %v112_v14, 0.0  ;;  %v117_v15 = vmul.f32 0.01, %v112_v14 }
 0x13c   :  { %v527_v16 = vpop.f32.mrf.mxu0 }
 0x13d   :  { %v680_v17 = vsel %vm116_vm5, %v112_v14, %v117_v15 }
 0x13e   :  { %v119_v18 = vmul.f32 %v680_v17, %v680_v17 }
 0x140   :  { %121 = vrot.lane.b32.xlu1 %v119_v18, %s615_s0 }
 0x1b2   :  { %v122_v19 = vpop.permute.xlu1 %121 }
 0x1b3   :  { %v125_v20 = vsel %vm124_vm6, %v680_v17, %v122_v19 }
 0x1b4   :  { %v126_v21 = vrot.slane %v125_v20, 4 }
 0x1b6   :  { %v127_v22 = vadd.f32 %v126_v21, %v125_v20 }
 0x1b8   :  { %v128_v23 = vrot.slane %v127_v22, 2 }
 0x1ba   :  { %v129_v24 = vadd.f32 %v128_v23, %v127_v22 }
 0x1bc   :  { %v130_v25 = vrot.slane %v129_v24, 1 }
 0x1be   :  { %v131_v26 = vadd.f32 %v130_v25, %v129_v24 }
 0x1c0   :  { %v687_v27 = vmul.f32 0.125, %v131_v26 }
 0x1c2   :  { %v133_v28 = vmul.f32 %v687_v27, %v687_v27 }
 0x1c4   :  { %135 = vrot.lane.b32.xlu1 %v133_v28, %s615_s0 }
 0x1c8   :  { %159 = vrot.lane.b32.xlu1 %v665_v7, %s615_s0 }
 0x236   :  { %v136_v32 = vpop.permute.xlu1 %135 }
 0x237   :  { %v138_v33 = vsub.f32 %v687_v27, %v136_v32  ;;  %v395_v32 = vld [vmem:[%s812_s2 + $0xb8] sm:$0xff] }
 0x239   :  { %v139_v34 = vmax.f32 %v138_v33, 0.0 }
 0x23a   :  { %v160_v61 = vpop.permute.xlu1 %159 }
 0x23b   :  { %v140_v35 = vadd.f32 1e-05, %v139_v34 }
 0x23d   :  { %585 = vrsqrt.f32 %v140_v35  ;;  %v394_v35 = vld [vmem:[%s812_s2 + $0xb0] sm:$0xff]  ;;  %s589_s2 = scalar_lea.vmem %s478_s21, 128 }
 0x23e   :  { %p590_p0 = scmp.ne.s32.totalorder %s478_s21, %s589_s2  ;;  %p595_p2 = scmp.lt.s32.totalorder %s589_s2, %s589_s2 }
 0x240   :  { %p596_p3 = por %p595_p2, %p594_p1 }
 0x242   :  { %p597_p4 = pnand %p596_p3, %p590_p0 }
 0x24a   :  { %v586_v44 = vpop.eup %585 }
 0x24b   :  { %143 = vrot.lane.b32.xlu0 %v586_v44, %s615_s0 }
 0x2bd   :  { %v144_v53 = vpop.permute.xlu0 %143 }
 0x2be   :  { %v146_v54 = vmul.f32 %v144_v53, %v18_v51 }
 0x2c0   :  { %v147_v56 = vmul.f32 %v146_v54, %v687_v27  ;;  %v152_v57 = vrot.slane %v146_v54, %v764_v52 }
 0x2c2   :  { %v148_v58 = vsub.f32 %v769_v55, %v147_v56  ;;  %v153_v59 = vmul.f32 %v152_v57, %v680_v17 }
 0x2c4   :  { %v157_v60 = vrot.slane %v148_v58, %v764_v52 }
 0x2c6   :  { %v158_v62 = vadd.f32 %v157_v60, %v153_v59 }
 0x2c8   :  { %v162_v63 = vsel %vm124_vm6, %v158_v62, %v160_v61 }
 0x2c9   :  { %547 = vmatmul.mubr.msk.f32.vlgmr.msra.gmra.mxu1 %vm172_vm7, %v162_v63 }
 0x2ca   :  { %574 = vmatprep.mubr.msk.f32.mxu1 %vm613_vm0, %v612_v3  ;;  %571 = vmatpush3.msra.mxu1 %v395_v32 }
 0x2cb   :  { %572 = vmatprep.subr.mxu1 %v612_v3 }
 0x2cc   :  { %573 = vmatpush3.msra.mxu1 %v394_v35 }
 0x389   :  { %v242_v2 = vpop.f32.mrf.mxu1 }
 0x38a   :  { %v246_v4 = vadd.f32 %v242_v2, %v158_v62 }
 0x38b   :  { %v548_v5 = vpop.f32.mrf.mxu1 }
 0x38c   :  { %v247_v6 = vsel %vm124_vm6, %v246_v4, %v160_v61 }
 0x38d   :  { %568 = vmatmul.mubr.msk.f32.vlgmr.msra.gmra.mxu0 %vm172_vm7, %v247_v6 }
 0x44d   :  { %v326_v8 = vpop.f32.mrf.mxu0 }
 0x44e   :  { %vm330_vm8 = vcmp.ge.f32.partialorder %v326_v8, 0.0  ;;  %v331_v9 = vmul.f32 0.01, %v326_v8 }
 0x44f   :  { %v569_v10 = vpop.f32.mrf.mxu0 }
 0x450   :  { %v332_v11 = vsel %vm330_vm8, %v326_v8, %v331_v9 }
 0x451   :  { %v333_v12 = vmul.f32 %v332_v11, %v332_v11 }
 0x453   :  { %335 = vrot.lane.b32.xlu0 %v333_v12, %s616_s14 }
 0x4c5   :  { %v336_v13 = vpop.permute.xlu0 %335 }
 0x4c6   :  { %v339_v14 = vsel %vm338_vm9, %v332_v11, %v336_v13 }
 0x4c7   :  { %v340_v15 = vsel %vm34_vm2, %v339_v14, 0.0 }
 0x4c8   :  { %v341_v16 = vrot.slane %v340_v15, 4 }
 0x4ca   :  { %v342_v17 = vadd.f32 %v341_v16, %v340_v15 }
 0x4cc   :  { %v343_v18 = vrot.slane %v342_v17, 2 }
 0x4ce   :  { %v344_v19 = vadd.f32 %v343_v18, %v342_v17 }
 0x4d0   :  { %v345_v20 = vrot.slane %v344_v19, 1 }
 0x4d2   :  { %v346_v21 = vadd.f32 %v345_v20, %v344_v19 }
 0x4d4   :  { %v347_v22 = vmul.f32 0.125, %v346_v21 }
 0x4d6   :  { %v348_v23 = vmul.f32 %v347_v22, %v347_v22 }
 0x4d8   :  { %350 = vrot.lane.b32.xlu1 %v348_v23, %s616_s14 }
 0x54a   :  { %v351_v24 = vpop.permute.xlu1 %350 }
 0x54b   :  { %v353_v25 = vsub.f32 %v347_v22, %v351_v24 }
 0x54d   :  { %v354_v26 = vmax.f32 %v353_v25, 0.0 }
 0x54f   :  { %v355_v27 = vadd.f32 1e-05, %v354_v26 }
 0x551   :  { %587 = vrsqrt.f32 %v355_v27 }
 0x55e   :  { %v588_v28 = vpop.eup %587 }
 0x55f   :  { %358 = vrot.lane.b32.xlu0 %v588_v28, %s617_s15 }
 0x5d1   :  { %v359_v29 = vpop.permute.xlu0 %358 }
 0x5d2   :  { %v361_v30 = vmul.f32 %v359_v29, %v18_v51 }
 0x5d4   :  { %363 = vrot.lane.b32.xlu1 %v361_v30, %s615_s0  ;;  %v375_v31 = vrot.slane %v361_v30, %v764_v52 }
 0x5d8   :  { %377 = vrot.lane.b32.xlu1 %v375_v31, %s615_s0 }
 0x5dc   :  { %390 = vrot.lane.b32.xlu1 %v665_v7, %s616_s14 }
 0x646   :  { %v364_v33 = vpop.permute.xlu1 %363 }
 0x647   :  { %v366_v34 = vmul.f32 %v364_v33, %v347_v22 }
 0x649   :  { %368 = vrot.lane.b32.xlu0 %v366_v34, %s615_s0 }
 0x64a   :  { %v378_v38 = vpop.permute.xlu1 %377 }
 0x64b   :  { %v380_v39 = vmul.f32 %v378_v38, %v332_v11 }
 0x64e   :  { %v391_v3 = vpop.permute.xlu1 %390 }
 0x6bb   :  { %v369_v36 = vpop.permute.xlu0 %368 }
 0x6bc   :  { %v371_v37 = vsub.f32 %v769_v55, %v369_v36 }
 0x6be   :  { %v384_v7 = vrot.slane %v371_v37, %v764_v52 }
 0x6c0   :  { %386 = vrot.lane.b32.xlu0 %v384_v7, %s615_s0 }
 0x732   :  { %v387_v40 = vpop.permute.xlu0 %386 }
 0x733   :  { %v389_v41 = vadd.f32 %v387_v40, %v380_v39 }
 0x735   :  { %v393_v42 = vsel %vm338_vm9, %v389_v41, %v391_v3 }
 0x736   :  { %575 = vmatmul.mubr.msk.f32.vlgmr.msra.gmra.mxu1 %vm34_vm2, %v393_v42 }
 0x7f6   :  { %v465_v43 = vpop.f32.mrf.mxu1 }
 0x7f7   :  { %v469_v44 = vadd.f32 %v465_v43, %v389_v41 }
 0x7f8   :  { %v576_v45 = vpop.f32.mrf.mxu1 }
 0x7f9   :  { %470 = vst.msk [vmem:[#allocation2] sm:$0xff] %vm338_vm9, %v469_v44 }
 0x7fa   :  { %600 = shalt.err (!%p597_p4)
}
 0x7fb   :  { %480 = dma.vmem_to_hbm [thread:$0]  %s478_s21, 128, %s814_s4, [#allocation3]  }
 0x7fc   :  { %609 = dma.done.wait [#allocation3], 128  }
 0x7fd   :  { %610 = vsyncadd [#allocation3], 4294967168 }
 0x7fe   :  { %484 = vsyncpa [#allocation3], 1 }

</bundles_post_ra>
